<compile_context>
chip_gen: v6e
topology: v6e:2x2x1
jax: 0.10.0
libtpu: 0.0.40
codegen_flags: <defaults>
</compile_context>

<pallas_src>
import jax
import jax.numpy as jnp
import numpy as np
from jax.experimental import pallas as pl
from jax.experimental.pallas import tpu as pltpu

LANE = 128


def _round_up(x, m):
    return ((x + m - 1) // m) * m


def _make_mlp_kernel(num_layers):
    def kernel(x_ref, w_ref, b_ref, out_ref):
        # x_ref: (TM, P) bf16 ; w_ref: (L, P, P) bf16 ; b_ref: (L, P) f32
        h = x_ref[...]
        for l in range(num_layers):              # unrolled: L is a Python int
            acc = jnp.dot(h, w_ref[l], preferred_element_type=jnp.float32)
            acc = acc + b_ref[l:l + 1, :]        # (1, P) f32 bias, broadcast over rows
            if l < num_layers - 1:
                h = jnp.maximum(acc, 0.0).astype(jnp.bfloat16)   # ReLU in f32, re-pack bf16
            else:
                out_ref[...] = acc.astype(out_ref.dtype)         # bf16 logits, lane-dense
    return kernel


def pack_mlp_params(params):
    """One-time packing of [(W1,b1),...,(W4,b4)] (W_i: (in,out), b_i: (out,)).

    Returns (w_stack (L,P,P) bf16, b_stack (L,P) f32, pdim, num_classes).
    Done in numpy so the per-forward path pays no pad/scatter/cast XLA ops.
    """
    num_layers = len(params)
    dims = [params[0][0].shape[0]] + [w.shape[1] for w, _ in params]
    pdim = max(_round_up(d, LANE) for d in dims)

    w_np = np.zeros((num_layers, pdim, pdim), np.float32)
    b_np = np.zeros((num_layers, pdim), np.float32)
    for l, (w, b) in enumerate(params):
        fi, fo = w.shape
        w_np[l, :fi, :fo] = np.asarray(w, np.float32)
        b_np[l, :fo] = np.asarray(b, np.float32).reshape(-1)

    w_stack = jnp.asarray(w_np, dtype=jnp.bfloat16)
    b_stack = jnp.asarray(b_np, dtype=jnp.float32)
    return w_stack, b_stack, pdim, params[-1][0].shape[1]


def mlp_classifier_forward(x, w_stack, b_stack, num_classes, *, tm=2048):
    """x: (batch, input_dim) f32; w_stack/b_stack from pack_mlp_params."""
    batch, input_dim = x.shape
    num_layers, pdim, _ = w_stack.shape

    # Batch tile: multiple of 16 (native bf16 (16,128) sublane tile), capped
    # at the padded batch.
    batch16 = _round_up(batch, 16)
    tm = max(16, min(_round_up(tm, 16), batch16))
    # v7x megacore: if the whole batch fits in one tile but supports >= 2
    # tiles, split so the "parallel" grid axis actually spans both TCs.
    if batch16 <= tm and batch16 >= 32:
        tm = _round_up(batch16 // 2, 16)
    batch_p = _round_up(batch, tm)

    # Single pad (batch -> batch_p, features -> pdim), then one bf16 cast.
    x_pad = jnp.pad(x, ((0, batch_p - batch), (0, pdim - input_dim))).astype(jnp.bfloat16)

    grid = (batch_p // tm,)
    flops = 2 * batch_p * pdim * pdim * num_layers
    bytes_accessed = (x_pad.size * 2 + w_stack.size * 2
                      + b_stack.size * 4 + batch_p * pdim * 2)

    # VMEM: double-buffered x/out tiles (bf16) + single-buffered weights/biases.
    vmem_bytes = 2 * (tm * pdim * 2) * 2 + w_stack.size * 2 + b_stack.size * 4
    compiler_kwargs = dict(dimension_semantics=("parallel",))
    if vmem_bytes > 12 * 1024 * 1024:   # only relevant for very large tm (v5e 16 MiB default)
        compiler_kwargs["vmem_limit_bytes"] = int(min(2 * vmem_bytes, 64 * 1024 * 1024))

    out_pad = pl.pallas_call(
        _make_mlp_kernel(num_layers),
        out_shape=jax.ShapeDtypeStruct((batch_p, pdim), jnp.bfloat16),
        grid=grid,
        in_specs=[
            # activations: tiled over batch, double-buffered by default
            pl.BlockSpec((tm, pdim), lambda i: (i, 0)),
            # weights/biases: resident across all grid steps, single-buffered
            pl.BlockSpec((num_layers, pdim, pdim), lambda i: (0, 0, 0),
                         pipeline_mode=pl.Buffered(1)),
            pl.BlockSpec((num_layers, pdim), lambda i: (0, 0),
                         pipeline_mode=pl.Buffered(1)),
        ],
        out_specs=pl.BlockSpec((tm, pdim), lambda i: (i, 0)),
        compiler_params=pltpu.CompilerParams(**compiler_kwargs),
        cost_estimate=pl.CostEstimate(
            flops=flops, transcendentals=0, bytes_accessed=bytes_accessed),
    )(x_pad, w_stack, b_stack)

    # Drop padded batch rows / padded class columns; f32 interface like PyTorch.
    return out_pad[:batch, :num_classes].astype(jnp.float32)


if __name__ == "__main__":
    # Small shapes consistent with MLPClassifier(input_dim, num_classes).
    batch = 8
    input_dim = 32
    num_classes = 10

    key = jax.random.PRNGKey(0)
    kx, k1, k2, k3, k4 = jax.random.split(key, 5)

    x = jax.random.normal(kx, (batch, input_dim), jnp.float32)

    dims = [input_dim, 128, 64, 32, num_classes]
    layer_keys = [k1, k2, k3, k4]
    params = []
    for i in range(4):
        kw, kb = jax.random.split(layer_keys[i])
        bound = 1.0 / np.sqrt(dims[i])
        w = jax.random.uniform(kw, (dims[i], dims[i + 1]), jnp.float32, -bound, bound)
        b = jax.random.uniform(kb, (dims[i + 1],), jnp.float32, -bound, bound)
        params.append((w, b))

    # One-time packing ("model init"), then the forward call.
    w_stack, b_stack, _, ncls = pack_mlp_params(params)
    out = mlp_classifier_forward(x, w_stack, b_stack, ncls)
    out = jax.block_until_ready(out)
    assert out.shape == (batch, num_classes)

    # Reference mirroring the kernel numerics: bf16-rounded matmul inputs,
    # f32 accumulate / bias / ReLU, bf16 logits.
    def bf16_round(a):
        return np.asarray(jnp.asarray(a).astype(jnp.bfloat16).astype(jnp.float32))

    ref = np.asarray(x, np.float32)
    for i, (w, b) in enumerate(params):
        ref = bf16_round(ref) @ bf16_round(w) + np.asarray(b, np.float32)[None, :]
        if i < 3:
            ref = np.maximum(ref, 0.0)
    ref = bf16_round(ref)   # kernel emits bf16 logits

    np.testing.assert_allclose(np.asarray(out), ref, rtol=1e-2, atol=1e-2)
    print("KERNEL_OK")
</pallas_src>

<mosaic_0001>
module attributes {stable_mosaic.version = 11 : i64} {
  func.func @kernel(%arg0: i32, %arg1: memref<16x128xbf16, #tpu.memory_space<vmem>>, %arg2: memref<4x128x128xbf16, #tpu.memory_space<vmem>>, %arg3: memref<4x128xf32, #tpu.memory_space<vmem>>, %arg4: memref<16x128xbf16, #tpu.memory_space<vmem>>) attributes {dimension_semantics = [#tpu.dimension_semantics<parallel>], iteration_bounds = array<i64: 1>, scalar_prefetch = 0 : i64, scratch_operands = 0 : i64, tpu.core_type = #tpu.core_type<tc>, window_params = [{transform_indices = @transform_0, window_bounds = array<i64: 16, 128>}, {pipeline_mode = #tpu.pipeline_mode<synchronous>, transform_indices = @transform_1, window_bounds = array<i64: 4, 128, 128>}, {pipeline_mode = #tpu.pipeline_mode<synchronous>, transform_indices = @transform_2, window_bounds = array<i64: 4, 128>}, {transform_indices = @transform_3, window_bounds = array<i64: 16, 128>}]} {
    %c0 = arith.constant 0 : index
    %c0_0 = arith.constant 0 : index
    %0 = vector.load %arg1[%c0, %c0_0] : memref<16x128xbf16, #tpu.memory_space<vmem>>, vector<16x128xbf16>
    %c0_1 = arith.constant 0 : index
    %c0_2 = arith.constant 0 : index
    %c0_3 = arith.constant 0 : index
    %1 = vector.load %arg2[%c0_1, %c0_2, %c0_3] : memref<4x128x128xbf16, #tpu.memory_space<vmem>>, vector<1x128x128xbf16>
    %2 = vector.shape_cast %1 : vector<1x128x128xbf16> to vector<128x128xbf16>
    %cst = arith.constant dense<0.000000e+00> : vector<16x128xf32>
    %3 = tpu.matmul %0, %2, %cst {dimension_numbers = #tpu.dot_dimension_numbers<[1], [0], [0], [1], [0, 0, 1, 1], [], []>} : vector<16x128xbf16>, vector<128x128xbf16>, vector<16x128xf32> -> vector<16x128xf32>
    %c0_4 = arith.constant 0 : index
    %c0_5 = arith.constant 0 : index
    %4 = vector.load %arg3[%c0_4, %c0_5] : memref<4x128xf32, #tpu.memory_space<vmem>>, vector<1x128xf32>
    %5 = vector.broadcast %4 : vector<1x128xf32> to vector<16x128xf32>
    %6 = arith.addf %3, %5 : vector<16x128xf32>
    %cst_6 = arith.constant 0.000000e+00 : f32
    %7 = vector.broadcast %cst_6 : f32 to vector<16x128xf32>
    %8 = arith.maximumf %6, %7 : vector<16x128xf32>
    %9 = arith.truncf %8 : vector<16x128xf32> to vector<16x128xbf16>
    %c1 = arith.constant 1 : index
    %c0_7 = arith.constant 0 : index
    %c0_8 = arith.constant 0 : index
    %10 = vector.load %arg2[%c1, %c0_7, %c0_8] : memref<4x128x128xbf16, #tpu.memory_space<vmem>>, vector<1x128x128xbf16>
    %11 = vector.shape_cast %10 : vector<1x128x128xbf16> to vector<128x128xbf16>
    %cst_9 = arith.constant dense<0.000000e+00> : vector<16x128xf32>
    %12 = tpu.matmul %9, %11, %cst_9 {dimension_numbers = #tpu.dot_dimension_numbers<[1], [0], [0], [1], [0, 0, 1, 1], [], []>} : vector<16x128xbf16>, vector<128x128xbf16>, vector<16x128xf32> -> vector<16x128xf32>
    %c1_10 = arith.constant 1 : index
    %c0_11 = arith.constant 0 : index
    %13 = vector.load %arg3[%c1_10, %c0_11] : memref<4x128xf32, #tpu.memory_space<vmem>>, vector<1x128xf32>
    %14 = vector.broadcast %13 : vector<1x128xf32> to vector<16x128xf32>
    %15 = arith.addf %12, %14 : vector<16x128xf32>
    %cst_12 = arith.constant 0.000000e+00 : f32
    %16 = vector.broadcast %cst_12 : f32 to vector<16x128xf32>
    %17 = arith.maximumf %15, %16 : vector<16x128xf32>
    %18 = arith.truncf %17 : vector<16x128xf32> to vector<16x128xbf16>
    %c2 = arith.constant 2 : index
    %c0_13 = arith.constant 0 : index
    %c0_14 = arith.constant 0 : index
    %19 = vector.load %arg2[%c2, %c0_13, %c0_14] : memref<4x128x128xbf16, #tpu.memory_space<vmem>>, vector<1x128x128xbf16>
    %20 = vector.shape_cast %19 : vector<1x128x128xbf16> to vector<128x128xbf16>
    %cst_15 = arith.constant dense<0.000000e+00> : vector<16x128xf32>
    %21 = tpu.matmul %18, %20, %cst_15 {dimension_numbers = #tpu.dot_dimension_numbers<[1], [0], [0], [1], [0, 0, 1, 1], [], []>} : vector<16x128xbf16>, vector<128x128xbf16>, vector<16x128xf32> -> vector<16x128xf32>
    %c2_16 = arith.constant 2 : index
    %c0_17 = arith.constant 0 : index
    %22 = vector.load %arg3[%c2_16, %c0_17] : memref<4x128xf32, #tpu.memory_space<vmem>>, vector<1x128xf32>
    %23 = vector.broadcast %22 : vector<1x128xf32> to vector<16x128xf32>
    %24 = arith.addf %21, %23 : vector<16x128xf32>
    %cst_18 = arith.constant 0.000000e+00 : f32
    %25 = vector.broadcast %cst_18 : f32 to vector<16x128xf32>
    %26 = arith.maximumf %24, %25 : vector<16x128xf32>
    %27 = arith.truncf %26 : vector<16x128xf32> to vector<16x128xbf16>
    %c3 = arith.constant 3 : index
    %c0_19 = arith.constant 0 : index
    %c0_20 = arith.constant 0 : index
    %28 = vector.load %arg2[%c3, %c0_19, %c0_20] : memref<4x128x128xbf16, #tpu.memory_space<vmem>>, vector<1x128x128xbf16>
    %29 = vector.shape_cast %28 : vector<1x128x128xbf16> to vector<128x128xbf16>
    %cst_21 = arith.constant dense<0.000000e+00> : vector<16x128xf32>
    %30 = tpu.matmul %27, %29, %cst_21 {dimension_numbers = #tpu.dot_dimension_numbers<[1], [0], [0], [1], [0, 0, 1, 1], [], []>} : vector<16x128xbf16>, vector<128x128xbf16>, vector<16x128xf32> -> vector<16x128xf32>
    %c3_22 = arith.constant 3 : index
    %c0_23 = arith.constant 0 : index
    %31 = vector.load %arg3[%c3_22, %c0_23] : memref<4x128xf32, #tpu.memory_space<vmem>>, vector<1x128xf32>
    %32 = vector.broadcast %31 : vector<1x128xf32> to vector<16x128xf32>
    %33 = arith.addf %30, %32 : vector<16x128xf32>
    %34 = arith.truncf %33 : vector<16x128xf32> to vector<16x128xbf16>
    %c0_24 = arith.constant 0 : index
    %c0_25 = arith.constant 0 : index
    %35 = vector.load %arg4[%c0_24, %c0_25] : memref<16x128xbf16, #tpu.memory_space<vmem>>, vector<16x128xbf16>
    tpu.vector_store %arg4[%c0_24, %c0_25], %34 {strides = array<i32>} : memref<16x128xbf16, #tpu.memory_space<vmem>>, vector<16x128xbf16>,
    return
  }
  func.func @transform_0(%arg0: i32) -> (i32, i32) {
    %c0_i32 = arith.constant 0 : i32
    %c0_i32_0 = arith.constant 0 : i32
    return %arg0, %c0_i32 : i32, i32
  }
  func.func @transform_1(%arg0: i32) -> (i32, i32, i32) {
    %c0_i32 = arith.constant 0 : i32
    %c0_i32_0 = arith.constant 0 : i32
    %c0_i32_1 = arith.constant 0 : i32
    %c0_i32_2 = arith.constant 0 : i32
    return %c0_i32, %c0_i32_0, %c0_i32_1 : i32, i32, i32
  }
  func.func @transform_2(%arg0: i32) -> (i32, i32) {
    %c0_i32 = arith.constant 0 : i32
    %c0_i32_0 = arith.constant 0 : i32
    %c0_i32_1 = arith.constant 0 : i32
    return %c0_i32, %c0_i32_0 : i32, i32
  }
  func.func @transform_3(%arg0: i32) -> (i32, i32) {
    %c0_i32 = arith.constant 0 : i32
    %c0_i32_0 = arith.constant 0 : i32
    return %arg0, %c0_i32 : i32, i32
  }
}

</mosaic_0001>

<bundles_post_ra>
// kernel: tpu_custom_call.1
= control target key start
LH: loop header
LB: loop body
LE: loop exit
PB: predicated region body
PF: predicated region fallthrough
CT: control target
= control target key end

     0   :  { %8 = vsyncpa [#allocation3], 0  ;;  %s921_s0 = inlined_call_operand.hbm [shape: bf16[16,128], index: 0, kind: input, shape index: {}]   ;;  %s922_s1 = inlined_call_operand.hbm [shape: bf16[4,128,128], index: 1, kind: input, shape index: {}]   ;;  %s923_s2 = inlined_call_operand.hbm [shape: f32[4,128], index: 2, kind: input, shape index: {}]   ;;  %s924_s3 = inlined_call_operand.hbm [shape: bf16[16,128], index: 3, kind: output, shape index: {}]  }
   0x1   :  { %9 = vsyncpa [#allocation6], 0 }
   0x2   :  { %10 = vsyncpa [#allocation4], 0  ;;  %s832_s12 = smov [#allocation5]   ;;  %s833_s14 = smov [#allocation2]  }
   0x3   :  { %s28_s13 = sshll.u32 %s832_s12, 4  ;;  %s16_s15 = sshll.u32 %s833_s14, 4  ;;  %s29_s13 = int_to_ptr.vmem [resolvable:$true] %s28_s13  ;;  %s17_s15 = int_to_ptr.vmem [resolvable:$true] %s16_s15 }
   0x4   :  { %s754_s16 = scalar_lea.vmem %s29_s13, 4096  ;;  %p759_p1 = scmp.lt.s32.totalorder %s29_s13, %s29_s13 }
   0x5   :  { %p755_p0 = scmp.ne.s32.totalorder %s29_s13, %s754_s16  ;;  %p760_p2 = scmp.lt.s32.totalorder %s754_s16, %s754_s16 }
   0x7   :  { %p761_p3 = por %p760_p2, %p759_p1 }
   0x9   :  { %p762_p4 = pnand %p761_p3, %p755_p0 }
   0xb   :  { %765 = shalt.err (!%p762_p4)
}
   0xc   :  { %s834_s17 = smov 64   ;;  %s835_s18 = smov 4  }
   0xd   :  { %34 = dma.hbm_to_vmem [thread:$0]  %s922_s1, 4096, %s29_s13, [#allocation6], %s834_s17, %s834_s17, %s835_s18  }
   0xe   :  { %s774_s21 = scalar_lea.vmem %s17_s15, 128  ;;  %p779_p6 = scmp.lt.s32.totalorder %s17_s15, %s17_s15 }
   0xf   :  { %p775_p5 = scmp.ne.s32.totalorder %s17_s15, %s774_s21  ;;  %p780_p7 = scmp.lt.s32.totalorder %s774_s21, %s774_s21 }
  0x11   :  { %p781_p8 = por %p780_p7, %p779_p6 }
  0x13   :  { %p782_p9 = pnand %p781_p8, %p775_p5 }
  0x15   :  { %785 = shalt.err (!%p782_p9)
}
  0x16   :  { %22 = dma.hbm_to_vmem [thread:$0]  %s921_s0, 128, %s17_s15, [#allocation3], %s834_s17, %s834_s17, %s835_s18  }
  0x17   :  { %s836_s24 = smov [#allocation7]  }
  0x18   :  { %s41_s25 = sshll.u32 %s836_s24, 4  ;;  %s42_s25 = int_to_ptr.vmem [resolvable:$true] %s41_s25 }
  0x19   :  { %s794_s26 = scalar_lea.vmem %s42_s25, 64  ;;  %p799_p11 = scmp.lt.s32.totalorder %s42_s25, %s42_s25 }
  0x1a   :  { %p795_p10 = scmp.ne.s32.totalorder %s42_s25, %s794_s26  ;;  %p800_p12 = scmp.lt.s32.totalorder %s794_s26, %s794_s26 }
  0x1c   :  { %p801_p13 = por %p800_p12, %p799_p11 }
  0x1e   :  { %p802_p0 = pnand %p801_p13, %p795_p10 }
  0x20   :  { %805 = shalt.err (!%p802_p0)
}
  0x21   :  { %44 = dma.hbm_to_vmem [thread:$0]  %s923_s2, 64, %s42_s25, [#allocation6]  }
  0x22   :  { %826 = dma.done.wait [#allocation3], 128  }
  0x23   :  { %827 = vsyncadd [#allocation3], 4294967168 }
  0x24   :  { %828 = dma.done.wait [#allocation6], 4160  }
  0x25   :  { %829 = vsyncadd [#allocation6], 4294963136  ;;  %v837_v0 = vmov 0.0   ;;  %vm838_vm0 = vmmov 0   ;;  %v713_v1 = vld [vmem:[#allocation5 + $0x38] sm:$0xff]   ;;  %v714_v2 = vld [vmem:[#allocation5 + $0x30] sm:$0xff]  }
  0x26   :  { %625 = vmatprep.subr.bf16.mxu0 %v837_v0  ;;  %641 = vmatprep.mubr.msk.bf16.mxu0 %vm838_vm0, %v837_v0  ;;  %v715_v3 = vld [vmem:[#allocation5 + $0x28] sm:$0xff]   ;;  %v722_v4 = vld [vmem:[#allocation5 + $0x78] sm:$0xff]   ;;  %v716_v5 = vld [vmem:[#allocation5 + $0x20] sm:$0xff]   ;;  %s839_s0 = smov [#allocation8]  }
  0x27   :  { %645 = vmatprep.subr.bf16.mxu1 %v837_v0  ;;  %661 = vmatprep.mubr.msk.bf16.mxu1 %vm838_vm0, %v837_v0  ;;  %v723_v6 = vld [vmem:[#allocation5 + $0x70] sm:$0xff]   ;;  %v717_v7 = vld [vmem:[#allocation5 + $0x18] sm:$0xff]   ;;  %v724_v8 = vld [vmem:[#allocation5 + $0x68] sm:$0xff]   ;;  %s530_s2 = sshll.u32 %s839_s0, 4  ;;  %s531_s2 = int_to_ptr.vmem [resolvable:$true] %s530_s2 }
  0x28   :  { %626 = vmatpush3.bf16.msra.mxu0 %v713_v1  ;;  %646 = vmatpush3.bf16.msra.mxu1 %v722_v4  ;;  %v718_v9 = vld [vmem:[#allocation5 + $0x10] sm:$0xff]   ;;  %v725_v10 = vld [vmem:[#allocation5 + $0x60] sm:$0xff]   ;;  %v719_v11 = vld [vmem:[#allocation5 + $0x8] sm:$0xff]   ;;  %s806_s28 = scalar_lea.vmem %s531_s2, 128  ;;  %p811_p2 = scmp.lt.s32.totalorder %s531_s2, %s531_s2 }
  0x29   :  { %627 = vmatprep.subr.bf16.mxu0 %v837_v0  ;;  %647 = vmatprep.subr.bf16.mxu1 %v837_v0  ;;  %v726_v12 = vld [vmem:[#allocation5 + $0x58] sm:$0xff]   ;;  %v720_v13 = vld [vmem:[#allocation5] sm:$0xff]   ;;  %v727_v15 = vld [vmem:[#allocation5 + $0x50] sm:$0xff]   ;;  %p807_p1 = scmp.ne.s32.totalorder %s531_s2, %s806_s28  ;;  %p812_p3 = scmp.lt.s32.totalorder %s806_s28, %s806_s28 }
  0x2a   :  { %v721_v14 = vld [vmem:[#allocation2] sm:$0xff]   ;;  %v728_v16 = vld [vmem:[#allocation5 + $0x48] sm:$0xff]   ;;  %v729_v17 = vld [vmem:[#allocation5 + $0x40] sm:$0xff]  }
  0x2b   :  { %v730_v18 = vld [vmem:[#allocation5 + $0xb8] sm:$0xff]   ;;  %v731_v19 = vld [vmem:[#allocation5 + $0xb0] sm:$0xff]   ;;  %v732_v20 = vld [vmem:[#allocation5 + $0xa8] sm:$0xff]   ;;  %p813_p4 = por %p812_p3, %p811_p2 }
  0x2c   :  { %628 = vmatpush3.bf16.msra.mxu0 %v714_v2  ;;  %648 = vmatpush3.bf16.msra.mxu1 %v723_v6  ;;  %v733_v21 = vld [vmem:[#allocation5 + $0xa0] sm:$0xff]   ;;  %v734_v22 = vld [vmem:[#allocation5 + $0x98] sm:$0xff]   ;;  %v735_v33 = vld [vmem:[#allocation5 + $0x90] sm:$0xff]  }
  0x2d   :  { %629 = vmatprep.subr.bf16.mxu0 %v837_v0  ;;  %649 = vmatprep.subr.bf16.mxu1 %v837_v0  ;;  %v543_v23 = vld [vmem:[#allocation7] ss:$0 sm:$0xff]  ;;  %v736_v34 = vld [vmem:[#allocation5 + $0x88] sm:$0xff]   ;;  %v738_v36 = vld [vmem:[#allocation5 + $0xf8] sm:$0xff]   ;;  %p814_p5 = pnand %p813_p4, %p807_p1 }
  0x2e   :  { %v737_v35 = vld [vmem:[#allocation5 + $0x80] sm:$0xff]   ;;  %v739_v37 = vld [vmem:[#allocation5 + $0xf0] sm:$0xff]   ;;  %v740_v38 = vld [vmem:[#allocation5 + $0xe8] sm:$0xff]  }
  0x2f   :  { %v741_v39 = vld [vmem:[#allocation5 + $0xe0] sm:$0xff]   ;;  %v742_v40 = vld [vmem:[#allocation5 + $0xd8] sm:$0xff]   ;;  %v743_v51 = vld [vmem:[#allocation5 + $0xd0] sm:$0xff]  }
  0x30   :  { %630 = vmatpush3.bf16.msra.mxu0 %v715_v3  ;;  %650 = vmatpush3.bf16.msra.mxu1 %v724_v8  ;;  %v553_v41 = vld [vmem:[#allocation7 + $0x1] ss:$0 sm:$0xff]  ;;  %v744_v52 = vld [vmem:[#allocation5 + $0xc8] sm:$0xff]   ;;  %v562_v54 = vld [vmem:[#allocation7 + $0x2] ss:$0 sm:$0xff] }
  0x31   :  { %631 = vmatprep.subr.bf16.mxu0 %v837_v0  ;;  %651 = vmatprep.subr.bf16.mxu1 %v837_v0  ;;  %v745_v53 = vld [vmem:[#allocation5 + $0xc0] sm:$0xff]  }
  0x32   :  { %v571_v2 = vld [vmem:[#allocation7 + $0x3] ss:$0 sm:$0xff] }
  0x34   :  { %632 = vmatpush3.bf16.msra.mxu0 %v716_v5  ;;  %652 = vmatpush3.bf16.msra.mxu1 %v725_v10 }
  0x35   :  { %633 = vmatprep.subr.bf16.mxu0 %v837_v0  ;;  %653 = vmatprep.subr.bf16.mxu1 %v837_v0 }
  0x38   :  { %634 = vmatpush3.bf16.msra.mxu0 %v717_v7  ;;  %654 = vmatpush3.bf16.msra.mxu1 %v726_v12 }
  0x39   :  { %635 = vmatprep.subr.bf16.mxu0 %v837_v0  ;;  %655 = vmatprep.subr.bf16.mxu1 %v837_v0 }
  0x3c   :  { %636 = vmatpush3.bf16.msra.mxu0 %v718_v9  ;;  %656 = vmatpush3.bf16.msra.mxu1 %v727_v15 }
  0x3d   :  { %637 = vmatprep.subr.bf16.mxu0 %v837_v0  ;;  %657 = vmatprep.subr.bf16.mxu1 %v837_v0 }
  0x40   :  { %638 = vmatpush3.bf16.msra.mxu0 %v719_v11  ;;  %658 = vmatpush3.bf16.msra.mxu1 %v728_v16 }
  0x41   :  { %639 = vmatprep.subr.bf16.mxu0 %v837_v0  ;;  %659 = vmatprep.subr.bf16.mxu1 %v837_v0 }
  0x44   :  { %640 = vmatpush3.bf16.msra.mxu0 %v720_v13  ;;  %660 = vmatpush3.bf16.msra.mxu1 %v729_v17 }
  0x45   :  { %665 = vmatprep.subr.bf16.mxu0 %v837_v0  ;;  %685 = vmatprep.subr.bf16.mxu1 %v837_v0 }
  0x47   :  { %642 = vmatmul.mubr.bf16.vlgmr.msra.gmra.mxu0 %v721_v14 }
  0x48   :  { %681 = vmatprep.mubr.msk.bf16.mxu0 %vm838_vm0, %v837_v0  ;;  %666 = vmatpush3.bf16.msra.mxu0 %v730_v18 }
  0x49   :  { %667 = vmatprep.subr.bf16.mxu0 %v837_v0 }
  0x4c   :  { %668 = vmatpush3.bf16.msra.mxu0 %v731_v19 }
  0x4d   :  { %669 = vmatprep.subr.bf16.mxu0 %v837_v0 }
  0x50   :  { %670 = vmatpush3.bf16.msra.mxu0 %v732_v20 }
  0x51   :  { %671 = vmatprep.subr.bf16.mxu0 %v837_v0 }
  0x54   :  { %672 = vmatpush3.bf16.msra.mxu0 %v733_v21 }
  0x55   :  { %673 = vmatprep.subr.bf16.mxu0 %v837_v0 }
  0x58   :  { %674 = vmatpush3.bf16.msra.mxu0 %v734_v22 }
  0x59   :  { %675 = vmatprep.subr.bf16.mxu0 %v837_v0 }
  0x5c   :  { %676 = vmatpush3.bf16.msra.mxu0 %v735_v33 }
  0x5d   :  { %677 = vmatprep.subr.bf16.mxu0 %v837_v0 }
  0x60   :  { %678 = vmatpush3.bf16.msra.mxu0 %v736_v34 }
  0x61   :  { %679 = vmatprep.subr.bf16.mxu0 %v837_v0 }
  0x64   :  { %680 = vmatpush3.bf16.msra.mxu0 %v737_v35 }
 0x107   :  { %v166_v24 = vpop.f32.mrf.mxu0 }
 0x108   :  { %v167_v26 = vadd.f32 %v543_v23, %v166_v24 }
 0x109   :  { %v643_v25 = vpop.f32.mrf.mxu0 }
 0x10a   :  { %v173_v30 = vmax.f32 %v167_v26, 0.0 }
 0x10b   :  { %v169_v27 = vpop.f32.mrf.mxu0 }
 0x10c   :  { %v170_v28 = vadd.f32 %v543_v23, %v169_v27 }
 0x10d   :  { %v644_v29 = vpop.f32.mrf.mxu0 }
 0x10e   :  { %v174_v31 = vmax.f32 %v170_v28, 0.0 }
 0x110   :  { %v175_v32 = vpack.c.bf16 %v174_v31, %v173_v30 }
 0x112   :  { %662 = vmatmul.mubr.bf16.vlgmr.msra.gmra.mxu1 %v175_v32 }
 0x113   :  { %701 = vmatprep.mubr.msk.bf16.mxu1 %vm838_vm0, %v837_v0  ;;  %686 = vmatpush3.bf16.msra.mxu1 %v738_v36 }
 0x114   :  { %687 = vmatprep.subr.bf16.mxu1 %v837_v0 }
 0x117   :  { %688 = vmatpush3.bf16.msra.mxu1 %v739_v37 }
 0x118   :  { %689 = vmatprep.subr.bf16.mxu1 %v837_v0 }
 0x11b   :  { %690 = vmatpush3.bf16.msra.mxu1 %v740_v38 }
 0x11c   :  { %691 = vmatprep.subr.bf16.mxu1 %v837_v0 }
 0x11f   :  { %692 = vmatpush3.bf16.msra.mxu1 %v741_v39 }
 0x120   :  { %693 = vmatprep.subr.bf16.mxu1 %v837_v0 }
 0x123   :  { %694 = vmatpush3.bf16.msra.mxu1 %v742_v40 }
 0x124   :  { %695 = vmatprep.subr.bf16.mxu1 %v837_v0 }
 0x127   :  { %696 = vmatpush3.bf16.msra.mxu1 %v743_v51 }
 0x128   :  { %697 = vmatprep.subr.bf16.mxu1 %v837_v0 }
 0x12b   :  { %698 = vmatpush3.bf16.msra.mxu1 %v744_v52 }
 0x12c   :  { %699 = vmatprep.subr.bf16.mxu1 %v837_v0 }
 0x12f   :  { %700 = vmatpush3.bf16.msra.mxu1 %v745_v53 }
 0x1d2   :  { %v280_v42 = vpop.f32.mrf.mxu1 }
 0x1d3   :  { %v281_v44 = vadd.f32 %v553_v41, %v280_v42 }
 0x1d4   :  { %v663_v43 = vpop.f32.mrf.mxu1 }
 0x1d5   :  { %v287_v48 = vmax.f32 %v281_v44, 0.0 }
 0x1d6   :  { %v283_v45 = vpop.f32.mrf.mxu1 }
 0x1d7   :  { %v284_v46 = vadd.f32 %v553_v41, %v283_v45 }
 0x1d8   :  { %v664_v47 = vpop.f32.mrf.mxu1 }
 0x1d9   :  { %v288_v49 = vmax.f32 %v284_v46, 0.0 }
 0x1db   :  { %v289_v50 = vpack.c.bf16 %v288_v49, %v287_v48 }
 0x1dd   :  { %682 = vmatmul.mubr.bf16.vlgmr.msra.gmra.mxu0 %v289_v50 }
 0x29d   :  { %v394_v55 = vpop.f32.mrf.mxu0 }
 0x29e   :  { %v395_v57 = vadd.f32 %v562_v54, %v394_v55 }
 0x29f   :  { %v683_v56 = vpop.f32.mrf.mxu0 }
 0x2a0   :  { %v401_v61 = vmax.f32 %v395_v57, 0.0 }
 0x2a1   :  { %v397_v58 = vpop.f32.mrf.mxu0 }
 0x2a2   :  { %v398_v59 = vadd.f32 %v562_v54, %v397_v58 }
 0x2a3   :  { %v684_v60 = vpop.f32.mrf.mxu0 }
 0x2a4   :  { %v402_v62 = vmax.f32 %v398_v59, 0.0 }
 0x2a6   :  { %v403_v63 = vpack.c.bf16 %v402_v62, %v401_v61 }
 0x2a8   :  { %702 = vmatmul.mubr.bf16.vlgmr.msra.gmra.mxu1 %v403_v63 }
 0x368   :  { %v508_v1 = vpop.f32.mrf.mxu1 }
 0x369   :  { %v509_v0 = vadd.f32 %v571_v2, %v508_v1 }
 0x36a   :  { %v703_v3 = vpop.f32.mrf.mxu1 }
 0x36c   :  { %v511_v4 = vpop.f32.mrf.mxu1 }
 0x36d   :  { %v512_v5 = vadd.f32 %v571_v2, %v511_v4 }
 0x36e   :  { %v704_v6 = vpop.f32.mrf.mxu1 }
 0x36f   :  { %v587_v7 = vpack.c.bf16 %v512_v5, %v509_v0 }
 0x371   :  { %588 = vst [vmem:[#allocation8] sm:$0xff] %v587_v7  }
 0x372   :  { %817 = shalt.err (!%p814_p5)
}
 0x373   :  { %536 = dma.vmem_to_hbm [thread:$0]  %s531_s2, 128, %s924_s3, [#allocation4], %s834_s17, %s834_s17, %s835_s18  }
 0x374   :  { %830 = dma.done.wait [#allocation4], 128  }
 0x375   :  { %831 = vsyncadd [#allocation4], 4294967168 }
 0x376   :  { %540 = vsyncpa [#allocation3], 1 }
 0x377   :  { %541 = vsyncpa [#allocation6], 1 }
 0x378   :  { %542 = vsyncpa [#allocation4], 1 }

</bundles_post_ra>
